<compile_context>
chip_gen: v7x
topology: tpu7x:2x2x1
jax: 0.10.0
libtpu: 0.0.40
codegen_flags: <defaults>
</compile_context>

<pallas_src>
import jax
import jax.numpy as jnp
from jax.experimental import pallas as pl
from jax.experimental.pallas import tpu as pltpu

# ---- small synthetic config (CLIP-text-like, scaled down) -------------------
B      = 2      # batch
S      = 8      # sequence length
D      = 32     # hidden size
H      = 2      # attention heads
HEAD   = D // H
LAYERS = 2      # transformer layers
MLP    = 4 * D  # intermediate size
PROJ   = 32     # text projection dim
VOCAB  = 64     # vocab size (highest id == EOS, as in CLIP)
EPS    = 1e-5
TB     = 1      # batch rows per grid step (batch grid axis is "parallel")

# packed small-parameter slab: row layout (all rows are width-D vectors)
ROW_LN1_G, ROW_LN1_B = 0, 1
ROW_BQ, ROW_BK, ROW_BV, ROW_BO = 2, 3, 4, 5
ROW_LN2_G, ROW_LN2_B, ROW_B2 = 6, 7, 8
N_SLAB = 9


def _layernorm(x, g, b):
    x = x.astype(jnp.float32)
    mu = jnp.mean(x, axis=-1, keepdims=True)
    var = jnp.mean((x - mu) ** 2, axis=-1, keepdims=True)
    return (x - mu) * jax.lax.rsqrt(var + EPS) * g + b


# -----------------------------------------------------------------------------
# Fused encoder: all layers + final LN + EOS pooling + projection in one kernel.
# Grid = (batch_tile, layer); the residual stream stays in VMEM scratch.
# -----------------------------------------------------------------------------
def clip_text_kernel(eos_ref,                 # scalar prefetch, SMEM (B,)
                     x0_ref,                  # (TB, S, D) bf16 embeddings
                     mask_ref,                # (1, S, S) f32 additive causal mask
                     slab_ref,                # (1, N_SLAB, D) f32 small params
                     wqkv_ref,                # (1, D, 3D) bf16
                     wo_ref,                  # (1, D, D)  bf16
                     w1_ref,                  # (1, D, MLP) bf16
                     b1_ref,                  # (1, 1, MLP) f32
                     w2_ref,                  # (1, MLP, D) bf16
                     fln_ref,                 # (2, D) f32  final LN gamma/beta
                     proj_ref,                # (D, PROJ) bf16 text projection
                     o_ref,                   # (1, TB, PROJ) f32
                     x_scratch):              # VMEM (TB, S, D) f32 residual
    bt = pl.program_id(0)
    layer = pl.program_id(1)

    @pl.when(layer == 0)
    def _():
        x_scratch[...] = x0_ref[...].astype(jnp.float32)

    slab = slab_ref[0]                                       # (N_SLAB, D) f32
    x2 = x_scratch[...].reshape(TB * S, D)                   # rows x lanes, f32

    # ---------------- pre-LN causal self-attention ----------------
    h = _layernorm(x2, slab[ROW_LN1_G:ROW_LN1_G + 1],
                   slab[ROW_LN1_B:ROW_LN1_B + 1]).astype(jnp.bfloat16)
    qkv = jnp.dot(h, wqkv_ref[0], preferred_element_type=jnp.float32)  # (TB*S,3D)

    scale = HEAD ** -0.5
    q = (qkv[:, 0 * D:1 * D] + slab[ROW_BQ:ROW_BQ + 1]) * scale
    k = qkv[:, 1 * D:2 * D] + slab[ROW_BK:ROW_BK + 1]
    v = qkv[:, 2 * D:3 * D] + slab[ROW_BV:ROW_BV + 1]

    def to_heads(t):                                         # (TB*S,D)->(TB*H,S,HEAD)
        t = t.astype(jnp.bfloat16).reshape(TB, S, H, HEAD)
        return jnp.transpose(t, (0, 2, 1, 3)).reshape(TB * H, S, HEAD)

    qh, kh, vh = to_heads(q), to_heads(k), to_heads(v)       # bf16 MXU operands

    sc = jnp.einsum('bqe,bke->bqk', qh, kh,
                    preferred_element_type=jnp.float32)      # (TB*H, S, S) f32
    sc = sc + mask_ref[...]                                  # additive causal mask
    sc = sc - jnp.max(sc, axis=-1, keepdims=True)
    p = jnp.exp(sc)
    p = p * pl.reciprocal(jnp.sum(p, axis=-1, keepdims=True), approx=True)
    ctx = jnp.einsum('bqk,bke->bqe', p.astype(jnp.bfloat16), vh,
                     preferred_element_type=jnp.float32)     # (TB*H, S, HEAD)
    ctx = jnp.transpose(ctx.reshape(TB, H, S, HEAD), (0, 2, 1, 3))
    ctx = ctx.reshape(TB * S, D).astype(jnp.bfloat16)

    attn = jnp.dot(ctx, wo_ref[0], preferred_element_type=jnp.float32) \
        + slab[ROW_BO:ROW_BO + 1]
    x2 = x2 + attn

    # ---------------- pre-LN quickGELU MLP ----------------
    h2 = _layernorm(x2, slab[ROW_LN2_G:ROW_LN2_G + 1],
                    slab[ROW_LN2_B:ROW_LN2_B + 1]).astype(jnp.bfloat16)
    m = jnp.dot(h2, w1_ref[0], preferred_element_type=jnp.float32) + b1_ref[0]
    m = m * jax.nn.sigmoid(1.702 * m)                        # quick_gelu (f32)
    m = jnp.dot(m.astype(jnp.bfloat16), w2_ref[0],
                preferred_element_type=jnp.float32) + slab[ROW_B2:ROW_B2 + 1]
    x2 = x2 + m

    x_scratch[...] = x2.reshape(TB, S, D)

    # -------- epilogue: final LN + EOS pooling + text_projection --------
    @pl.when(layer == pl.num_programs(1) - 1)
    def _():
        rows = []
        for b in range(TB):                                  # dynamic sublane reads
            eos_b = eos_ref[bt * TB + b]
            rows.append(x_scratch[b, pl.ds(eos_b, 1), :])    # (1, D) f32
        pooled = rows[0] if TB == 1 else jnp.concatenate(rows, axis=0)
        pooled = _layernorm(pooled, fln_ref[0:1], fln_ref[1:2])
        o_ref[0] = jnp.dot(pooled.astype(jnp.bfloat16), proj_ref[...],
                           preferred_element_type=jnp.float32)


# -----------------------------------------------------------------------------
# Parameter construction (deterministic; per-layer weights pre-stacked on a
# leading layer axis, small vectors packed into one slab) + full forward.
# -----------------------------------------------------------------------------
def init_params(key):
    keys = iter(jax.random.split(key, 8))

    def nrm(shape, dtype=jnp.bfloat16, scale=0.02):
        return (jax.random.normal(next(keys), shape, jnp.float32) * scale).astype(dtype)

    slab = jnp.zeros((LAYERS, N_SLAB, D), jnp.float32)
    slab = slab.at[:, ROW_LN1_G, :].set(1.0)     # ln1 gamma
    slab = slab.at[:, ROW_LN2_G, :].set(1.0)     # ln2 gamma
    # all biases / betas zero-initialised (rows already zero)

    fln = jnp.concatenate([jnp.ones((1, D), jnp.float32),
                           jnp.zeros((1, D), jnp.float32)], axis=0)   # (2, D)

    return {
        "token_emb": nrm((VOCAB, D), jnp.float32),
        "pos_emb":   nrm((S, D), jnp.float32),
        "slab":      slab,                                   # (L, 9, D) f32
        "wqkv":      nrm((LAYERS, D, 3 * D)),                # bf16
        "wo":        nrm((LAYERS, D, D)),                    # bf16
        "w1":        nrm((LAYERS, D, MLP)),                  # bf16
        "b1":        jnp.zeros((LAYERS, 1, MLP), jnp.float32),
        "w2":        nrm((LAYERS, MLP, D)),                  # bf16
        "fln":       fln,                                    # (2, D) f32
        "text_proj": nrm((D, PROJ)),                         # bf16
    }


def clip_get_text_features(token_ids, params):
    # Embedding gather + positional add stay in plain JAX (cheap, irregular gather).
    x0 = (params["token_emb"][token_ids]
          + params["pos_emb"][None, :, :]).astype(jnp.bfloat16)        # (B, S, D)
    # CLIP pools at the EOS token = argmax of input ids (EOS has the max id).
    eos_idx = jnp.argmax(token_ids, axis=-1).astype(jnp.int32)         # (B,)
    # Host-precomputed additive causal mask; scores stay f32, so -1e9 is safe.
    causal_bias = jnp.triu(jnp.full((S, S), -1e9, jnp.float32), k=1)[None]  # (1,S,S)

    def lspec(tail_shape):
        z = (0,) * len(tail_shape)
        return pl.BlockSpec((1,) + tail_shape,
                            lambda bt, l, eos, _z=z: (l,) + _z)

    def cspec(shape):
        z = (0,) * len(shape)
        return pl.BlockSpec(shape, lambda bt, l, eos, _z=z: _z)

    in_specs = [
        pl.BlockSpec((TB, S, D), lambda bt, l, eos: (bt, 0, 0)),   # x0
        cspec((1, S, S)),                                          # causal mask
        lspec((N_SLAB, D)),                                        # slab
        lspec((D, 3 * D)),                                         # wqkv
        lspec((D, D)),                                             # wo
        lspec((D, MLP)),                                           # w1
        lspec((1, MLP)),                                           # b1
        lspec((MLP, D)),                                           # w2
        cspec((2, D)),                                             # final LN
        cspec((D, PROJ)),                                          # text projection
    ]

    out = pl.pallas_call(
        clip_text_kernel,
        out_shape=jax.ShapeDtypeStruct((B // TB, TB, PROJ), jnp.float32),
        grid_spec=pltpu.PrefetchScalarGridSpec(
            num_scalar_prefetch=1,
            grid=(B // TB, LAYERS),
            in_specs=in_specs,
            out_specs=pl.BlockSpec((1, TB, PROJ), lambda bt, l, eos: (bt, 0, 0)),
            scratch_shapes=[pltpu.VMEM((TB, S, D), jnp.float32)],
        ),
        compiler_params=pltpu.CompilerParams(
            # batch tiles independent (megacore-shardable on v7x); layer axis
            # is a sequential dependence chain through the residual scratch.
            dimension_semantics=("parallel", "arbitrary")),
    )(eos_idx, x0, causal_bias,
      params["slab"], params["wqkv"], params["wo"],
      params["w1"], params["b1"], params["w2"],
      params["fln"], params["text_proj"])

    return out.reshape(B, PROJ)


if __name__ == "__main__":
    key = jax.random.PRNGKey(0)
    k_tok, k_par = jax.random.split(key)

    # deterministic "tokenized text": random ids, EOS (= VOCAB-1) at last slot
    token_ids = jax.random.randint(k_tok, (B, S), 0, VOCAB - 1, dtype=jnp.int32)
    token_ids = token_ids.at[:, -1].set(VOCAB - 1)

    params = init_params(k_par)

    text_features = clip_get_text_features(token_ids, params)
    text_features = jax.block_until_ready(text_features)

    assert text_features.shape == (B, PROJ)
    assert bool(jnp.all(jnp.isfinite(text_features)))
    print("KERNEL_OK")
</pallas_src>

<mosaic_0001>
module attributes {stable_mosaic.version = 11 : i64} {
  func.func @clip_text_kernel(%arg0: i32, %arg1: i32, %arg2: memref<2xi32, #tpu.memory_space<smem>>, %arg3: memref<1x8x32xbf16, #tpu.memory_space<vmem>>, %arg4: memref<1x8x8xf32, #tpu.memory_space<vmem>>, %arg5: memref<1x9x32xf32, #tpu.memory_space<vmem>>, %arg6: memref<1x32x96xbf16, #tpu.memory_space<vmem>>, %arg7: memref<1x32x32xbf16, #tpu.memory_space<vmem>>, %arg8: memref<1x32x128xbf16, #tpu.memory_space<vmem>>, %arg9: memref<1x1x128xf32, #tpu.memory_space<vmem>>, %arg10: memref<1x128x32xbf16, #tpu.memory_space<vmem>>, %arg11: memref<2x32xf32, #tpu.memory_space<vmem>>, %arg12: memref<32x32xbf16, #tpu.memory_space<vmem>>, %arg13: memref<1x1x32xf32, #tpu.memory_space<vmem>>, %arg14: memref<1x8x32xf32, #tpu.memory_space<vmem>>) attributes {dimension_semantics = [#tpu.dimension_semantics<parallel>, #tpu.dimension_semantics<arbitrary>], iteration_bounds = array<i64: 2, 2>, scalar_prefetch = 1 : i64, scratch_operands = 1 : i64, tpu.core_type = #tpu.core_type<tc>, window_params = [{transform_indices = @transform_0, window_bounds = array<i64: 1, 8, 32>}, {pipeline_mode = #tpu.pipeline_mode<synchronous>, transform_indices = @transform_1, window_bounds = array<i64: 1, 8, 8>}, {transform_indices = @transform_2, window_bounds = array<i64: 1, 9, 32>}, {transform_indices = @transform_3, window_bounds = array<i64: 1, 32, 96>}, {transform_indices = @transform_4, window_bounds = array<i64: 1, 32, 32>}, {transform_indices = @transform_5, window_bounds = array<i64: 1, 32, 128>}, {transform_indices = @transform_6, window_bounds = array<i64: 1, 1, 128>}, {transform_indices = @transform_7, window_bounds = array<i64: 1, 128, 32>}, {pipeline_mode = #tpu.pipeline_mode<synchronous>, transform_indices = @transform_8, window_bounds = array<i64: 2, 32>}, {pipeline_mode = #tpu.pipeline_mode<synchronous>, transform_indices = @transform_9, window_bounds = array<i64: 32, 32>}, {transform_indices = @transform_10, window_bounds = array<i64: 1, 1, 32>}]} {
    %c0_i32 = arith.constant 0 : i32
    %0 = arith.cmpi eq, %arg1, %c0_i32 : i32
    %1 = arith.extui %0 : i1 to i32
    %c0_i32_0 = arith.constant 0 : i32
    %2 = arith.cmpi ne, %1, %c0_i32_0 : i32
    scf.if %2 {
      %c0_48 = arith.constant 0 : index
      %c0_49 = arith.constant 0 : index
      %c0_50 = arith.constant 0 : index
      %141 = vector.load %arg3[%c0_48, %c0_49, %c0_50] : memref<1x8x32xbf16, #tpu.memory_space<vmem>>, vector<1x8x32xbf16>
      %142 = arith.extf %141 : vector<1x8x32xbf16> to vector<1x8x32xf32>
      %c0_51 = arith.constant 0 : index
      %c0_52 = arith.constant 0 : index
      %c0_53 = arith.constant 0 : index
      %143 = vector.load %arg14[%c0_51, %c0_52, %c0_53] : memref<1x8x32xf32, #tpu.memory_space<vmem>>, vector<1x8x32xf32>
      tpu.vector_store %arg14[%c0_51, %c0_52, %c0_53], %142 {strides = array<i32>} : memref<1x8x32xf32, #tpu.memory_space<vmem>>, vector<1x8x32xf32>,
    } else {
    }
    %c0 = arith.constant 0 : index
    %c0_1 = arith.constant 0 : index
    %c0_2 = arith.constant 0 : index
    %3 = vector.load %arg5[%c0, %c0_1, %c0_2] : memref<1x9x32xf32, #tpu.memory_space<vmem>>, vector<1x9x32xf32>
    %4 = vector.shape_cast %3 : vector<1x9x32xf32> to vector<9x32xf32>
    %c0_3 = arith.constant 0 : index
    %c0_4 = arith.constant 0 : index
    %c0_5 = arith.constant 0 : index
    %5 = vector.load %arg14[%c0_3, %c0_4, %c0_5] : memref<1x8x32xf32, #tpu.memory_space<vmem>>, vector<1x8x32xf32>
    %6 = vector.shape_cast %5 : vector<1x8x32xf32> to vector<8x32xf32>
    %7 = vector.extract_strided_slice %4 {offsets = [0, 0], sizes = [1, 32], strides = [1, 1]} : vector<9x32xf32> to vector<1x32xf32>
    %8 = vector.extract_strided_slice %4 {offsets = [1, 0], sizes = [1, 32], strides = [1, 1]} : vector<9x32xf32> to vector<1x32xf32>
    %cst = arith.constant dense<0.000000e+00> : vector<8xf32>
    %9 = vector.multi_reduction <add>, %6, %cst [1] : vector<8x32xf32> to vector<8xf32>
    %10 = vector.shape_cast %9 : vector<8xf32> to vector<8x1xf32>
    %cst_6 = arith.constant 3.200000e+01 : f32
    %11 = vector.broadcast %cst_6 : f32 to vector<8x1xf32>
    %12 = arith.divf %10, %11 : vector<8x1xf32>
    %13 = vector.broadcast %12 : vector<8x1xf32> to vector<8x32xf32>
    %14 = arith.subf %6, %13 : vector<8x32xf32>
    %15 = arith.mulf %14, %14 : vector<8x32xf32>
    %cst_7 = arith.constant dense<0.000000e+00> : vector<8xf32>
    %16 = vector.multi_reduction <add>, %15, %cst_7 [1] : vector<8x32xf32> to vector<8xf32>
    %17 = vector.shape_cast %16 : vector<8xf32> to vector<8x1xf32>
    %cst_8 = arith.constant 3.200000e+01 : f32
    %18 = vector.broadcast %cst_8 : f32 to vector<8x1xf32>
    %19 = arith.divf %17, %18 : vector<8x1xf32>
    %20 = vector.broadcast %12 : vector<8x1xf32> to vector<8x32xf32>
    %21 = arith.subf %6, %20 : vector<8x32xf32>
    %cst_9 = arith.constant 9.99999974E-6 : f32
    %22 = vector.broadcast %cst_9 : f32 to vector<8x1xf32>
    %23 = arith.addf %19, %22 : vector<8x1xf32>
    %24 = math.rsqrt %23 : vector<8x1xf32>
    %25 = vector.broadcast %24 : vector<8x1xf32> to vector<8x32xf32>
    %26 = arith.mulf %21, %25 : vector<8x32xf32>
    %27 = vector.broadcast %7 : vector<1x32xf32> to vector<8x32xf32>
    %28 = arith.mulf %26, %27 : vector<8x32xf32>
    %29 = vector.broadcast %8 : vector<1x32xf32> to vector<8x32xf32>
    %30 = arith.addf %28, %29 : vector<8x32xf32>
    %31 = arith.truncf %30 : vector<8x32xf32> to vector<8x32xbf16>
    %c0_10 = arith.constant 0 : index
    %c0_11 = arith.constant 0 : index
    %c0_12 = arith.constant 0 : index
    %32 = vector.load %arg6[%c0_10, %c0_11, %c0_12] : memref<1x32x96xbf16, #tpu.memory_space<vmem>>, vector<1x32x96xbf16>
    %33 = vector.shape_cast %32 : vector<1x32x96xbf16> to vector<32x96xbf16>
    %cst_13 = arith.constant dense<0.000000e+00> : vector<8x96xf32>
    %34 = tpu.matmul %31, %33, %cst_13 {dimension_numbers = #tpu.dot_dimension_numbers<[1], [0], [0], [1], [0, 0, 1, 1], [], []>} : vector<8x32xbf16>, vector<32x96xbf16>, vector<8x96xf32> -> vector<8x96xf32>
    %35 = vector.extract_strided_slice %34 {offsets = [0, 0], sizes = [8, 32], strides = [1, 1]} : vector<8x96xf32> to vector<8x32xf32>
    %36 = vector.extract_strided_slice %4 {offsets = [2, 0], sizes = [1, 32], strides = [1, 1]} : vector<9x32xf32> to vector<1x32xf32>
    %37 = vector.broadcast %36 : vector<1x32xf32> to vector<8x32xf32>
    %38 = arith.addf %35, %37 : vector<8x32xf32>
    %cst_14 = arith.constant 2.500000e-01 : f32
    %39 = vector.broadcast %cst_14 : f32 to vector<8x32xf32>
    %40 = arith.mulf %38, %39 : vector<8x32xf32>
    %41 = vector.extract_strided_slice %34 {offsets = [0, 32], sizes = [8, 32], strides = [1, 1]} : vector<8x96xf32> to vector<8x32xf32>
    %42 = vector.extract_strided_slice %4 {offsets = [3, 0], sizes = [1, 32], strides = [1, 1]} : vector<9x32xf32> to vector<1x32xf32>
    %43 = vector.broadcast %42 : vector<1x32xf32> to vector<8x32xf32>
    %44 = arith.addf %41, %43 : vector<8x32xf32>
    %45 = vector.extract_strided_slice %34 {offsets = [0, 64], sizes = [8, 32], strides = [1, 1]} : vector<8x96xf32> to vector<8x32xf32>
    %46 = vector.extract_strided_slice %4 {offsets = [4, 0], sizes = [1, 32], strides = [1, 1]} : vector<9x32xf32> to vector<1x32xf32>
    %47 = vector.broadcast %46 : vector<1x32xf32> to vector<8x32xf32>
    %48 = arith.addf %45, %47 : vector<8x32xf32>
    %49 = arith.truncf %40 : vector<8x32xf32> to vector<8x32xbf16>
    %50 = vector.shape_cast %49 : vector<8x32xbf16> to vector<1x8x2x16xbf16>
    %51 = tpu.transpose %50, [0, 2, 1, 3] : vector<1x8x2x16xbf16> -> vector<1x2x8x16xbf16>
    %52 = vector.shape_cast %51 : vector<1x2x8x16xbf16> to vector<2x8x16xbf16>
    %53 = arith.truncf %44 : vector<8x32xf32> to vector<8x32xbf16>
    %54 = vector.shape_cast %53 : vector<8x32xbf16> to vector<1x8x2x16xbf16>
    %55 = tpu.transpose %54, [0, 2, 1, 3] : vector<1x8x2x16xbf16> -> vector<1x2x8x16xbf16>
    %56 = vector.shape_cast %55 : vector<1x2x8x16xbf16> to vector<2x8x16xbf16>
    %57 = arith.truncf %48 : vector<8x32xf32> to vector<8x32xbf16>
    %58 = vector.shape_cast %57 : vector<8x32xbf16> to vector<1x8x2x16xbf16>
    %59 = tpu.transpose %58, [0, 2, 1, 3] : vector<1x8x2x16xbf16> -> vector<1x2x8x16xbf16>
    %60 = vector.shape_cast %59 : vector<1x2x8x16xbf16> to vector<2x8x16xbf16>
    "tpu.trace_start"() <{level = 10 : i32, message = "bqe,bke->bqk"}> : () -> ()
    %cst_15 = arith.constant dense<0.000000e+00> : vector<2x8x8xf32>
    %61 = tpu.matmul %52, %56, %cst_15 {dimension_numbers = #tpu.dot_dimension_numbers<[2], [2], [1], [1], [0, 0, 0, 1, 1, 1], [0], [0]>} : vector<2x8x16xbf16>, vector<2x8x16xbf16>, vector<2x8x8xf32> -> vector<2x8x8xf32>
    "tpu.trace_stop"() : () -> ()
    %c0_16 = arith.constant 0 : index
    %c0_17 = arith.constant 0 : index
    %c0_18 = arith.constant 0 : index
    %62 = vector.load %arg4[%c0_16, %c0_17, %c0_18] : memref<1x8x8xf32, #tpu.memory_space<vmem>>, vector<1x8x8xf32>
    %63 = vector.broadcast %62 : vector<1x8x8xf32> to vector<2x8x8xf32>
    %64 = arith.addf %61, %63 : vector<2x8x8xf32>
    %cst_19 = arith.constant dense<0xFF800000> : vector<2x8xf32>
    %65 = vector.multi_reduction <maximumf>, %64, %cst_19 [2] : vector<2x8x8xf32> to vector<2x8xf32>
    %66 = vector.shape_cast %65 : vector<2x8xf32> to vector<2x8x1xf32>
    %67 = vector.broadcast %66 : vector<2x8x1xf32> to vector<2x8x8xf32>
    %68 = arith.subf %64, %67 : vector<2x8x8xf32>
    %69 = math.exp %68 : vector<2x8x8xf32>
    %cst_20 = arith.constant dense<0.000000e+00> : vector<2x8xf32>
    %70 = vector.multi_reduction <add>, %69, %cst_20 [2] : vector<2x8x8xf32> to vector<2x8xf32>
    %71 = vector.shape_cast %70 : vector<2x8xf32> to vector<2x8x1xf32>
    %72 = tpu.reciprocal %71 {approx = true} : vector<2x8x1xf32> -> vector<2x8x1xf32>
    %73 = vector.broadcast %72 : vector<2x8x1xf32> to vector<2x8x8xf32>
    %74 = arith.mulf %69, %73 : vector<2x8x8xf32>
    %75 = arith.truncf %74 : vector<2x8x8xf32> to vector<2x8x8xbf16>
    "tpu.trace_start"() <{level = 10 : i32, message = "bqk,bke->bqe"}> : () -> ()
    %cst_21 = arith.constant dense<0.000000e+00> : vector<2x8x16xf32>
    %76 = tpu.matmul %75, %60, %cst_21 {dimension_numbers = #tpu.dot_dimension_numbers<[2], [1], [1], [2], [0, 0, 0, 1, 1, 2], [0], [0]>} : vector<2x8x8xbf16>, vector<2x8x16xbf16>, vector<2x8x16xf32> -> vector<2x8x16xf32>
    "tpu.trace_stop"() : () -> ()
    %77 = vector.shape_cast %76 : vector<2x8x16xf32> to vector<1x2x8x16xf32>
    %78 = tpu.transpose %77, [0, 2, 1, 3] : vector<1x2x8x16xf32> -> vector<1x8x2x16xf32>
    %79 = vector.shape_cast %78 : vector<1x8x2x16xf32> to vector<8x32xf32>
    %80 = arith.truncf %79 : vector<8x32xf32> to vector<8x32xbf16>
    %c0_22 = arith.constant 0 : index
    %c0_23 = arith.constant 0 : index
    %c0_24 = arith.constant 0 : index
    %81 = vector.load %arg7[%c0_22, %c0_23, %c0_24] : memref<1x32x32xbf16, #tpu.memory_space<vmem>>, vector<1x32x32xbf16>
    %82 = vector.shape_cast %81 : vector<1x32x32xbf16> to vector<32x32xbf16>
    %cst_25 = arith.constant dense<0.000000e+00> : vector<8x32xf32>
    %83 = tpu.matmul %80, %82, %cst_25 {dimension_numbers = #tpu.dot_dimension_numbers<[1], [0], [0], [1], [0, 0, 1, 1], [], []>} : vector<8x32xbf16>, vector<32x32xbf16>, vector<8x32xf32> -> vector<8x32xf32>
    %84 = vector.extract_strided_slice %4 {offsets = [5, 0], sizes = [1, 32], strides = [1, 1]} : vector<9x32xf32> to vector<1x32xf32>
    %85 = vector.broadcast %84 : vector<1x32xf32> to vector<8x32xf32>
    %86 = arith.addf %83, %85 : vector<8x32xf32>
    %87 = arith.addf %6, %86 : vector<8x32xf32>
    %88 = vector.extract_strided_slice %4 {offsets = [6, 0], sizes = [1, 32], strides = [1, 1]} : vector<9x32xf32> to vector<1x32xf32>
    %89 = vector.extract_strided_slice %4 {offsets = [7, 0], sizes = [1, 32], strides = [1, 1]} : vector<9x32xf32> to vector<1x32xf32>
    %cst_26 = arith.constant dense<0.000000e+00> : vector<8xf32>
    %90 = vector.multi_reduction <add>, %87, %cst_26 [1] : vector<8x32xf32> to vector<8xf32>
    %91 = vector.shape_cast %90 : vector<8xf32> to vector<8x1xf32>
    %cst_27 = arith.constant 3.200000e+01 : f32
    %92 = vector.broadcast %cst_27 : f32 to vector<8x1xf32>
    %93 = arith.divf %91, %92 : vector<8x1xf32>
    %94 = vector.broadcast %93 : vector<8x1xf32> to vector<8x32xf32>
    %95 = arith.subf %87, %94 : vector<8x32xf32>
    %96 = arith.mulf %95, %95 : vector<8x32xf32>
    %cst_28 = arith.constant dense<0.000000e+00> : vector<8xf32>
    %97 = vector.multi_reduction <add>, %96, %cst_28 [1] : vector<8x32xf32> to vector<8xf32>
    %98 = vector.shape_cast %97 : vector<8xf32> to vector<8x1xf32>
    %cst_29 = arith.constant 3.200000e+01 : f32
    %99 = vector.broadcast %cst_29 : f32 to vector<8x1xf32>
    %100 = arith.divf %98, %99 : vector<8x1xf32>
    %101 = vector.broadcast %93 : vector<8x1xf32> to vector<8x32xf32>
    %102 = arith.subf %87, %101 : vector<8x32xf32>
    %cst_30 = arith.constant 9.99999974E-6 : f32
    %103 = vector.broadcast %cst_30 : f32 to vector<8x1xf32>
    %104 = arith.addf %100, %103 : vector<8x1xf32>
    %105 = math.rsqrt %104 : vector<8x1xf32>
    %106 = vector.broadcast %105 : vector<8x1xf32> to vector<8x32xf32>
    %107 = arith.mulf %102, %106 : vector<8x32xf32>
    %108 = vector.broadcast %88 : vector<1x32xf32> to vector<8x32xf32>
    %109 = arith.mulf %107, %108 : vector<8x32xf32>
    %110 = vector.broadcast %89 : vector<1x32xf32> to vector<8x32xf32>
    %111 = arith.addf %109, %110 : vector<8x32xf32>
    %112 = arith.truncf %111 : vector<8x32xf32> to vector<8x32xbf16>
    %c0_31 = arith.constant 0 : index
    %c0_32 = arith.constant 0 : index
    %c0_33 = arith.constant 0 : index
    %113 = vector.load %arg8[%c0_31, %c0_32, %c0_33] : memref<1x32x128xbf16, #tpu.memory_space<vmem>>, vector<1x32x128xbf16>
    %114 = vector.shape_cast %113 : vector<1x32x128xbf16> to vector<32x128xbf16>
    %cst_34 = arith.constant dense<0.000000e+00> : vector<8x128xf32>
    %115 = tpu.matmul %112, %114, %cst_34 {dimension_numbers = #tpu.dot_dimension_numbers<[1], [0], [0], [1], [0, 0, 1, 1], [], []>} : vector<8x32xbf16>, vector<32x128xbf16>, vector<8x128xf32> -> vector<8x128xf32>
    %c0_35 = arith.constant 0 : index
    %c0_36 = arith.constant 0 : index
    %c0_37 = arith.constant 0 : index
    %116 = vector.load %arg9[%c0_35, %c0_36, %c0_37] : memref<1x1x128xf32, #tpu.memory_space<vmem>>, vector<1x1x128xf32>
    %117 = vector.shape_cast %116 : vector<1x1x128xf32> to vector<1x128xf32>
    %118 = vector.broadcast %117 : vector<1x128xf32> to vector<8x128xf32>
    %119 = arith.addf %115, %118 : vector<8x128xf32>
    %cst_38 = arith.constant 1.702000e+00 : f32
    %120 = vector.broadcast %cst_38 : f32 to vector<8x128xf32>
    %121 = arith.mulf %120, %119 : vector<8x128xf32>
    %122 = arith.negf %121 : vector<8x128xf32>
    %123 = math.exp %122 : vector<8x128xf32>
    %cst_39 = arith.constant 1.000000e+00 : f32
    %124 = vector.broadcast %cst_39 : f32 to vector<8x128xf32>
    %125 = arith.addf %124, %123 : vector<8x128xf32>
    %126 = arith.divf %124, %125 : vector<8x128xf32>
    %127 = arith.mulf %119, %126 : vector<8x128xf32>
    %128 = arith.truncf %127 : vector<8x128xf32> to vector<8x128xbf16>
    %c0_40 = arith.constant 0 : index
    %c0_41 = arith.constant 0 : index
    %c0_42 = arith.constant 0 : index
    %129 = vector.load %arg10[%c0_40, %c0_41, %c0_42] : memref<1x128x32xbf16, #tpu.memory_space<vmem>>, vector<1x128x32xbf16>
    %130 = vector.shape_cast %129 : vector<1x128x32xbf16> to vector<128x32xbf16>
    %cst_43 = arith.constant dense<0.000000e+00> : vector<8x32xf32>
    %131 = tpu.matmul %128, %130, %cst_43 {dimension_numbers = #tpu.dot_dimension_numbers<[1], [0], [0], [1], [0, 0, 1, 1], [], []>} : vector<8x128xbf16>, vector<128x32xbf16>, vector<8x32xf32> -> vector<8x32xf32>
    %132 = vector.extract_strided_slice %4 {offsets = [8, 0], sizes = [1, 32], strides = [1, 1]} : vector<9x32xf32> to vector<1x32xf32>
    %133 = vector.broadcast %132 : vector<1x32xf32> to vector<8x32xf32>
    %134 = arith.addf %131, %133 : vector<8x32xf32>
    %135 = arith.addf %87, %134 : vector<8x32xf32>
    %136 = vector.shape_cast %135 : vector<8x32xf32> to vector<1x8x32xf32>
    %c0_44 = arith.constant 0 : index
    %c0_45 = arith.constant 0 : index
    %c0_46 = arith.constant 0 : index
    %137 = vector.load %arg14[%c0_44, %c0_45, %c0_46] : memref<1x8x32xf32, #tpu.memory_space<vmem>>, vector<1x8x32xf32>
    tpu.vector_store %arg14[%c0_44, %c0_45, %c0_46], %136 {strides = array<i32>} : memref<1x8x32xf32, #tpu.memory_space<vmem>>, vector<1x8x32xf32>,
    %c1_i32 = arith.constant 1 : i32
    %138 = arith.cmpi eq, %arg1, %c1_i32 : i32
    %139 = arith.extui %138 : i1 to i32
    %c0_i32_47 = arith.constant 0 : i32
    %140 = arith.cmpi ne, %139, %c0_i32_47 : i32
    scf.if %140 {
      %c1_i32_48 = arith.constant 1 : i32
      %141 = arith.muli %arg0, %c1_i32_48 : i32
      %c0_i32_49 = arith.constant 0 : i32
      %142 = arith.addi %141, %c0_i32_49 : i32
      %143 = arith.index_cast %142 : i32 to index
      %144 = memref.load %arg2[%143] : memref<2xi32, #tpu.memory_space<smem>>
      %c0_50 = arith.constant 0 : index
      %145 = arith.index_cast %144 : i32 to index
      %c0_51 = arith.constant 0 : index
      %146 = vector.load %arg14[%c0_50, %145, %c0_51] : memref<1x8x32xf32, #tpu.memory_space<vmem>>, vector<1x1x32xf32>
      %147 = vector.shape_cast %146 : vector<1x1x32xf32> to vector<1x32xf32>
      %c0_52 = arith.constant 0 : index
      %c0_53 = arith.constant 0 : index
      %148 = vector.load %arg11[%c0_52, %c0_53] : memref<2x32xf32, #tpu.memory_space<vmem>>, vector<1x32xf32>
      %c1 = arith.constant 1 : index
      %c0_54 = arith.constant 0 : index
      %149 = vector.load %arg11[%c1, %c0_54] : memref<2x32xf32, #tpu.memory_space<vmem>>, vector<1x32xf32>
      %cst_55 = arith.constant dense<0.000000e+00> : vector<1xf32>
      %150 = vector.multi_reduction <add>, %147, %cst_55 [1] : vector<1x32xf32> to vector<1xf32>
      %151 = vector.shape_cast %150 : vector<1xf32> to vector<1x1xf32>
      %cst_56 = arith.constant 3.200000e+01 : f32
      %152 = vector.broadcast %cst_56 : f32 to vector<1x1xf32>
      %153 = arith.divf %151, %152 : vector<1x1xf32>
      %154 = vector.broadcast %153 : vector<1x1xf32> to vector<1x32xf32>
      %155 = arith.subf %147, %154 : vector<1x32xf32>
      %156 = arith.mulf %155, %155 : vector<1x32xf32>
      %cst_57 = arith.constant dense<0.000000e+00> : vector<1xf32>
      %157 = vector.multi_reduction <add>, %156, %cst_57 [1] : vector<1x32xf32> to vector<1xf32>
      %158 = vector.shape_cast %157 : vector<1xf32> to vector<1x1xf32>
      %cst_58 = arith.constant 3.200000e+01 : f32
      %159 = vector.broadcast %cst_58 : f32 to vector<1x1xf32>
      %160 = arith.divf %158, %159 : vector<1x1xf32>
      %161 = vector.broadcast %153 : vector<1x1xf32> to vector<1x32xf32>
      %162 = arith.subf %147, %161 : vector<1x32xf32>
      %cst_59 = arith.constant 9.99999974E-6 : f32
      %163 = vector.broadcast %cst_59 : f32 to vector<1x1xf32>
      %164 = arith.addf %160, %163 : vector<1x1xf32>
      %165 = math.rsqrt %164 : vector<1x1xf32>
      %166 = vector.broadcast %165 : vector<1x1xf32> to vector<1x32xf32>
      %167 = arith.mulf %162, %166 : vector<1x32xf32>
      %168 = arith.mulf %167, %148 : vector<1x32xf32>
      %169 = arith.addf %168, %149 : vector<1x32xf32>
      %170 = arith.truncf %169 : vector<1x32xf32> to vector<1x32xbf16>
      %c0_60 = arith.constant 0 : index
      %c0_61 = arith.constant 0 : index
      %171 = vector.load %arg12[%c0_60, %c0_61] : memref<32x32xbf16, #tpu.memory_space<vmem>>, vector<32x32xbf16>
      %cst_62 = arith.constant dense<0.000000e+00> : vector<1x32xf32>
      %172 = tpu.matmul %170, %171, %cst_62 {dimension_numbers = #tpu.dot_dimension_numbers<[1], [0], [0], [1], [0, 0, 1, 1], [], []>} : vector<1x32xbf16>, vector<32x32xbf16>, vector<1x32xf32> -> vector<1x32xf32>
      %c0_63 = arith.constant 0 : index
      %c0_64 = arith.constant 0 : index
      %c0_65 = arith.constant 0 : index
      %173 = vector.load %arg13[%c0_63, %c0_64, %c0_65] : memref<1x1x32xf32, #tpu.memory_space<vmem>>, vector<1x1x32xf32>
      %174 = vector.shape_cast %173 : vector<1x1x32xf32> to vector<1x32xf32>
      %175 = vector.shape_cast %172 : vector<1x32xf32> to vector<1x1x32xf32>
      tpu.vector_store %arg13[%c0_63, %c0_64, %c0_65], %175 {strides = array<i32>} : memref<1x1x32xf32, #tpu.memory_space<vmem>>, vector<1x1x32xf32>,
    } else {
    }
    return
  }
  func.func @transform_0(%arg0: i32, %arg1: i32, %arg2: memref<2xi32, #tpu.memory_space<smem>>) -> (i32, i32, i32) {
    %c0_i32 = arith.constant 0 : i32
    %c0_i32_0 = arith.constant 0 : i32
    %c0_i32_1 = arith.constant 0 : i32
    return %arg0, %c0_i32, %c0_i32_0 : i32, i32, i32
  }
  func.func @transform_1(%arg0: i32, %arg1: i32, %arg2: memref<2xi32, #tpu.memory_space<smem>>) -> (i32, i32, i32) {
    %c0_i32 = arith.constant 0 : i32
    %c0_i32_0 = arith.constant 0 : i32
    %c0_i32_1 = arith.constant 0 : i32
    %c0_i32_2 = arith.constant 0 : i32
    return %c0_i32, %c0_i32_0, %c0_i32_1 : i32, i32, i32
  }
  func.func @transform_2(%arg0: i32, %arg1: i32, %arg2: memref<2xi32, #tpu.memory_space<smem>>) -> (i32, i32, i32) {
    %c0_i32 = arith.constant 0 : i32
    %c0_i32_0 = arith.constant 0 : i32
    %c0_i32_1 = arith.constant 0 : i32
    return %arg1, %c0_i32, %c0_i32_0 : i32, i32, i32
  }
  func.func @transform_3(%arg0: i32, %arg1: i32, %arg2: memref<2xi32, #tpu.memory_space<smem>>) -> (i32, i32, i32) {
    %c0_i32 = arith.constant 0 : i32
    %c0_i32_0 = arith.constant 0 : i32
    %c0_i32_1 = arith.constant 0 : i32
    return %arg1, %c0_i32, %c0_i32_0 : i32, i32, i32
  }
  func.func @transform_4(%arg0: i32, %arg1: i32, %arg2: memref<2xi32, #tpu.memory_space<smem>>) -> (i32, i32, i32) {
    %c0_i32 = arith.constant 0 : i32
    %c0_i32_0 = arith.constant 0 : i32
    %c0_i32_1 = arith.constant 0 : i32
    return %arg1, %c0_i32, %c0_i32_0 : i32, i32, i32
  }
  func.func @transform_5(%arg0: i32, %arg1: i32, %arg2: memref<2xi32, #tpu.memory_space<smem>>) -> (i32, i32, i32) {
    %c0_i32 = arith.constant 0 : i32
    %c0_i32_0 = arith.constant 0 : i32
    %c0_i32_1 = arith.constant 0 : i32
    return %arg1, %c0_i32, %c0_i32_0 : i32, i32, i32
  }
  func.func @transform_6(%arg0: i32, %arg1: i32, %arg2: memref<2xi32, #tpu.memory_space<smem>>) -> (i32, i32, i32) {
    %c0_i32 = arith.constant 0 : i32
    %c0_i32_0 = arith.constant 0 : i32
    %c0_i32_1 = arith.constant 0 : i32
    return %arg1, %c0_i32, %c0_i32_0 : i32, i32, i32
  }
  func.func @transform_7(%arg0: i32, %arg1: i32, %arg2: memref<2xi32, #tpu.memory_space<smem>>) -> (i32, i32, i32) {
    %c0_i32 = arith.constant 0 : i32
    %c0_i32_0 = arith.constant 0 : i32
    %c0_i32_1 = arith.constant 0 : i32
    return %arg1, %c0_i32, %c0_i32_0 : i32, i32, i32
  }
  func.func @transform_8(%arg0: i32, %arg1: i32, %arg2: memref<2xi32, #tpu.memory_space<smem>>) -> (i32, i32) {
    %c0_i32 = arith.constant 0 : i32
    %c0_i32_0 = arith.constant 0 : i32
    %c0_i32_1 = arith.constant 0 : i32
    return %c0_i32, %c0_i32_0 : i32, i32
  }
  func.func @transform_9(%arg0: i32, %arg1: i32, %arg2: memref<2xi32, #tpu.memory_space<smem>>) -> (i32, i32) {
    %c0_i32 = arith.constant 0 : i32
    %c0_i32_0 = arith.constant 0 : i32
    %c0_i32_1 = arith.constant 0 : i32
    return %c0_i32, %c0_i32_0 : i32, i32
  }
  func.func @transform_10(%arg0: i32, %arg1: i32, %arg2: memref<2xi32, #tpu.memory_space<smem>>) -> (i32, i32, i32) {
    %c0_i32 = arith.constant 0 : i32
    %c0_i32_0 = arith.constant 0 : i32
    %c0_i32_1 = arith.constant 0 : i32
    return %arg0, %c0_i32, %c0_i32_0 : i32, i32, i32
  }
}

</mosaic_0001>

<bundles_post_ra>
// kernel: tpu_custom_call.1
= control target key start
LH: loop header
LB: loop body
LE: loop exit
PB: predicated region body
PF: predicated region fallthrough
CT: control target
= control target key end

     0   :  { %s2725_s0 = inlined_call_operand.vmem [shape: s32[2], index: 0, kind: input, shape index: {}]   ;;  %s2726_s1 = inlined_call_operand.vmem [shape: bf16[2,8,32], index: 1, kind: input, shape index: {}]   ;;  %s2727_s2 = inlined_call_operand.vmem [shape: f32[1,8,8], index: 2, kind: input, shape index: {}]   ;;  %s2728_s3 = inlined_call_operand.vmem [shape: f32[2,9,32], index: 3, kind: input, shape index: {}]   ;;  %s2729_s4 = inlined_call_operand.vmem [shape: bf16[2,32,96], index: 4, kind: input, shape index: {}]   ;;  %s2730_s5 = inlined_call_operand.vmem [shape: bf16[2,32,32], index: 5, kind: input, shape index: {}]   ;;  %s2731_s6 = inlined_call_operand.vmem [shape: bf16[2,32,128], index: 6, kind: input, shape index: {}]   ;;  %s2732_s7 = inlined_call_operand.vmem [shape: f32[2,1,128], index: 7, kind: input, shape index: {}]   ;;  %s2733_s8 = inlined_call_operand.vmem [shape: bf16[2,128,32], index: 8, kind: input, shape index: {}]   ;;  %s2734_s9 = inlined_call_operand.vmem [shape: f32[2,32], index: 9, kind: input, shape index: {}]   ;;  %s2735_s10 = inlined_call_operand.vmem [shape: bf16[32,32], index: 10, kind: input, shape index: {}]   ;;  %s2736_s11 = inlined_call_operand.hbm [shape: f32[2,1,32], index: 11, kind: output, shape index: {}]  }
   0x1   :  { %2746 = sst [smem:[#allocation18_spill]] %s2726_s1  ;;  %s16_s19 = sshll.u32 %s2725_s0, 4  ;;  %s17_s19 = int_to_ptr.vmem [resolvable:$true] %s16_s19 }
   0x2   :  { %2747 = sst [smem:[#allocation19_spill]] %s2728_s3  ;;  %s2155_s20 = scalar_lea.vmem %s17_s19, 16 }
   0x3   :  { %2748 = sst [smem:[#allocation20_spill]] %s2729_s4  ;;  %p2156_p0 = scmp.ne.s32.totalorder %s17_s19, %s2155_s20 }
   0x4   :  { %2749 = sst [smem:[#allocation21_spill]] %s2736_s11  ;;  %p2160_p1 = scmp.lt.s32.totalorder %s17_s19, %s17_s19 }
   0x5   :  { %p2161_p2 = scmp.lt.s32.totalorder %s2155_s20, %s2155_s20 }
   0x7   :  { %p2162_p3 = por %p2161_p2, %p2160_p1 }
   0x9   :  { %p2163_p4 = pnand %p2162_p3, %p2156_p0 }
   0xb   :  { %2166 = shalt.err (!%p2163_p4)  }
   0xc   :  { %s2265_s21 = smov [#allocation4]  }
   0xd   :  { %19 = dma.vmem_to_smem %s17_s19, 16, %s2265_s21, [#allocation3] }
   0xe   :  { %2227 = dma.done.wait [#allocation3], 16 }
   0xf   :  { %2228 = vsyncadd [#allocation3], 4294967280 }
  0x10   :  { %21 = sfence }
  0x11   :  { %22 = vsyncpa [#allocation6], 0 }
  0x12   :  { %24 = vsyncpa [#allocation6 + $0x1], 0  ;;  %s2342_s22 = smov 0   ;;  %s2344_s23 = smov 0  }
  0x13   :  { %s2346_s0 = smov 0   ;;  %s2348_s24 = smov 0  }
  0x14   :  { %s2350_s25 = smov 0   ;;  %s2352_s26 = smov 0  }
  0x15   :  { %s2354_s27 = smov 0   ;;  %s2356_s28 = smov 0  }
  0x16 LB: > { %2750 = sst [smem:[#allocation9_spill]] %s2235_s22  ;;  %s1877_s29 = sadd.s32 4294967295, %s2263_s28   ;;  %s2263_s28 = sphi %s2356_s28, %s30_s28   ;;  %s2259_s27 = sphi %s2354_s27, %s2775_s27   ;;  %s2255_s26 = sphi %s2352_s26, %s2774_s26   ;;  %s2251_s25 = sphi %s2350_s25, %s2773_s25   ;;  %s2247_s24 = sphi %s2348_s24, %s2772_s24   ;;  %s2243_s0 = sphi %s2346_s0, %s2771_s0   ;;  %s2239_s23 = sphi %s2344_s23, %s2777_s23   ;;  %s2235_s22 = sphi %s2342_s22, %s2776_s22  }
  0x17   : > { %2751 = sst [smem:[#allocation10_spill]] %s2243_s0  ;;  %s1878_s30 = sadd.s32 4294967294, %s2263_s28  }
  0x18   : > { %2752 = sst [smem:[#allocation11_spill]] %s2255_s26  ;;  %s39_s12 = sadd.s32 1, %s2255_s26 }
  0x19   : > { %2753 = sst [smem:[#allocation12_spill]] %s2259_s27  ;;  %p40_p5 = scmp.ge.s32.totalorder %s39_s12, 2 }
  0x1a   : > { %2754 = sst [smem:[#allocation13_spill]] %s2263_s28  ;;  %s42_s13 = sadd.s32 1, %s2259_s27 }
  0x1b   : > { %p304_p6 = scmp.ne.s32.totalorder %s2243_s0, %s2239_s23  ;;  %p305_p7 = scmp.eq.s32.totalorder %s1877_s29, 3 }
  0x1c   : > { %s2779_s12 = smov (%p40_p5, %s39_s12), 0  ;;  %s2781_s13 = smov (!%p40_p5, %s42_s13), %s2259_s27 }
  0x1d   : > { %2755 = sst [smem:[#allocation14_spill]] %s2779_s12  ;;  %p2391_p8 = por %p305_p7, %p304_p6 }
  0x1e   : > { %p310_p9 = scmp.ne.s32.totalorder %s2239_s23, %s2235_s22  ;;  %p44_p10 = scmp.ge.s32.totalorder %s2781_s13, 2 }
  0x1f   : > { %p311_p11 = scmp.eq.s32.totalorder %s1878_s30, 3  ;;  %p1881_p12 = scmp.ge.s32.totalorder %s2263_s28, 1 }
  0x20   : > { %p391_p13 = scmp.lt.s32.totalorder %s2263_s28, 5  ;;  %s2783_s13 = smov (%p44_p10, %s2781_s13), 0 }
  0x21   : > { %2757 = sst [smem:[#allocation15_spill]] %s2783_s13  ;;  %p2401_p0 = por %p311_p11, %p310_p9 }
  0x22   : > { %p392_p1 = pnand %p1881_p12, %p391_p13  ;;  %s291_s16 = ssub.s32 %s2259_s27, %s2783_s13 }
  0x23   : > { %s2758_s15 = scalar_select %p2401_p0, 1, 0 }
  0x24   : > { %s294_s17 = sadd.s32 1, %s2243_s0  ;;  %p292_p2 = scmp.eq.s32.totalorder %s291_s16, 0 }
  0x25   : > { %2759 = sst [smem:[#allocation16_spill]] %s2758_s15  ;;  %395 = sbr.rel (%p392_p1) target bundleno = 3310 (0xcee), region = 60 }
  0x26   : > { %s2409_s18 = scalar_select %p292_p2, %s2243_s0, %s294_s17  }
  0x27   : > { %p455_p3 = scmp.lt.s32.totalorder (!%p392_p1), %s2251_s25, 1  ;;  %p459_p4 = scmp.lt.s32.totalorder (!%p392_p1), %s2247_s24, 1 }
  0x28   : > { %2760 = sst [smem:[#allocation17_spill]] %s2409_s18  ;;  %s2761_s1 = sld [smem:[#allocation18_spill]] (!%p392_p1) }
  0x29   : > { %s2762_s3 = sld [smem:[#allocation19_spill]] (!%p392_p1)  ;;  %s2763_s4 = sld [smem:[#allocation20_spill]] (!%p392_p1) }
  0x2a   : > { %s2764_s19 = sand.u32 (!%p392_p1), 1, %s2239_s23   ;;  %p1893_p5 = scmp.ne.s32.totalorder (!%p392_p1), %s2247_s24, 0 }
  0x2c   : > { %s456_s20 = scalar_select %p455_p3, %s2251_s25, 1 }
  0x2d   : > { %s2416_s21 = scalar_select %p459_p4, %s2247_s24, 1 }
  0x2e   : > { %s1882_s29 = sshll.u32 %s456_s20, 2  ;;  %491 = sbr.rel (%p1893_p5) target bundleno = 53 (0x35), region = 64  ;;  %vm494_vm0 = vcmask (!%p1893_p5), 261120  }
  0x2f   : > { %s458_s17 = scalar_lea.vmem %s2761_s1, %s1882_s29  ;;  %s1927_s13 = sshll.u32 %s2416_s21, 4 }
  0x30   : > { %s2425_s26 = scalar_lea.vmem %s2762_s3, %s1927_s13  ;;  %s468_s0 = scalar_lea.vmem %s2763_s4, %s1927_s13  ;;  %v492_v0 = vld [vmem:[%s458_s17] sm:$0xf] (!%p1893_p5) }
  0x31   : > { %s2433_s28 = scalar_lea.vmem %s2730_s5, %s1927_s13  ;;  %s2438_s30 = scalar_lea.vmem %s2731_s6, %s1927_s13  ;;  %v493_v1 = vunpack.c.l.bf16 (!%p1893_p5), %v492_v0 }
  0x32   : > { %s481_s27 = scalar_lea.vmem %s2732_s7, %s2416_s21  ;;  %s1931_s12 = sshll.u32 %s2416_s21, 6 }
  0x33   : > { %s2448_s18 = scalar_lea.vmem %s2733_s8, %s1931_s12  ;;  %s2452_s4 = scalar_lea.vmem [#allocation5], %s2764_s19  ;;  %495 = vst.msk [vmem:[#allocation2] sm:$0xff] (!%p1893_p5), %vm494_vm0, %v493_v1 }
  0x35 PF: > { %vm499_vm1 = vcmask 261120   ;;  %v2121_v9 = vld [vmem:[%s468_s0] sm:$0xff]   ;;  %v2266_v10 = vmov 0.0   ;;  %vm2267_vm2 = vmmov 0   ;;  %v2122_v11 = vld [vmem:[%s468_s0 + $0x8] sm:$0xff]   ;;  %v514_v12 = vlaneseq  ;;  %s2268_s1 = smov 32  }
  0x36   : > { %1961 = vmatprep.subr.bf16.mxu0 %v2266_v10  ;;  %1965 = vmatprep.mubr.msk.bf16.mxu0 %vm2267_vm2, %v2266_v10  ;;  %v2473_v15 = vld [vmem:[%s2425_s26] sm:$0xff]  ;;  %s2269_s3 = smov 96   ;;  %s2270_s11 = smov 112   ;;  %v2272_v44 = vmov 1983009808   ;;  %v2274_v55 = vmov 0  }
  0x37   : > { %1962 = vmatpush3.bf16.msra.mxu0 %v2121_v9  ;;  %1981 = vmatprep.subr.bf16.mxu1 %v2266_v10  ;;  %v2469_v13 = vshrl.u32 %v514_v12, 7  ;;  %s2271_s22 = smov 64   ;;  %v613_v45 = vunpack.c.l.s4 %v2272_v44  ;;  %v2273_v47 = vmov 1934713408   ;;  %vm1036_vm3 = vcmask 130048   ;;  %p1920_p6 = scmp.ne.s32.totalorder %s2247_s24, 1 }
  0x38   : > { %1963 = vmatprep.subr.bf16.mxu0 %v2266_v10  ;;  %1983 = vmatprep.mubr.msk.bf16.mxu1 %vm2267_vm2, %v2266_v10  ;;  %v621_v48 = vunpack.c.l.s4 %v2273_v47  ;;  %vm1129_vm4 = vcmask 64512   ;;  %vm1157_vm5 = vcmask 1043456   ;;  %s1646_s21 = sld [smem:[#allocation4 + %s2251_s25]] (!%p1920_p6)  ;;  %vm1651_vm6 = vcmask (!%p1920_p6), 253952  }
  0x39   : > { %v592_v14 = vsub.s32 3, %v2469_v13  ;;  %v516_v20 = vsub.s32 0, %v2469_v13  ;;  %v521_v21 = vsub.s32 1, %v2469_v13  ;;  %v586_v36 = vsub.s32 2, %v2469_v13 }
  0x3a   : > { %v2455_v2 = vld [vmem:[#allocation2] sm:$0xff]  ;;  %v601_v41 = vsub.s32 4, %v2469_v13  ;;  %v614_v46 = vunpack.c.0.s8 %v613_v45  ;;  %v622_v50 = vunpack.c.0.s8 %v621_v48  ;;  %vm2277_vm7 = vmmov (!%p1920_p6), 0  }
  0x3b   : > { %v500_v3 = vsel %vm499_vm1, %v2455_v2, 0.0  ;;  %1964 = vmatpush3.bf16.msra.mxu0 %v2122_v11  ;;  %v593_v16 = vrot.slane %v2473_v15, %v592_v14  ;;  %v517_v22 = vrot.slane %v2473_v15, %v516_v20  ;;  %v522_v25 = vrot.slane %v2473_v15, %v521_v21 }
  0x3c   : > { %501 = vadd.xlane.f32.xlu0 %v500_v3  ;;  %1969 = vmatprep.subr.bf16.mxu0 %v2266_v10  ;;  %v587_v37 = vrot.slane %v2473_v15, %v586_v36  ;;  %v602_v43 = vrot.slane %v2473_v15, %v601_v41  ;;  %v2495_v49 = vsub.s32 %v614_v46, %v2469_v13 }
  0x3d   : > { %595 = vrot.lane.b32.xlu1 %v593_v16, %s2268_s1  ;;  %v2499_v53 = vsub.s32 %v622_v50, %v2469_v13 }
  0x3e   : > { %s1647_s20 = scalar_lea.vmem (!%p1920_p6), [#allocation2], %s1646_s21 }
  0xaf   : > { %v596_v29 = vpop.permute.xlu1 %595 }
  0xc9   : > { %v502_v4 = vpop.xlane.xlu0 %501 }
  0xca   : > { %v504_v5 = vmul.f32 0.03125, %v502_v4 }
  0xcc   : > { %v505_v6 = vsub.f32 %v2455_v2, %v504_v5 }
  0xce   : > { %v506_v7 = vmul.f32 %v505_v6, %v505_v6 }
  0xd0   : > { %v507_v8 = vsel %vm499_vm1, %v506_v7, 0.0 }
  0xd1   : > { %508 = vadd.xlane.f32.xlu0 %v507_v8 }
 0x15e   : > { %v509_v17 = vpop.xlane.xlu0 %508 }
 0x15f   : > { %v510_v18 = vmul.f32 0.03125, %v509_v17 }
 0x161   : > { %v511_v19 = vadd.f32 1e-05, %v510_v18 }
 0x163   : > { %2135 = vrsqrt.f32 %v511_v19 }
 0x16d   : > { %v2136_v23 = vpop.eup %2135 }
 0x16e   : > { %v513_v24 = vmul.f32 %v2136_v23, %v505_v6 }
 0x170   : > { %v518_v26 = vmul.f32 %v517_v22, %v513_v24 }
 0x172   : > { %v523_v27 = vadd.f32 %v522_v25, %v518_v26 }
 0x174   : > { %v524_v28 = vpack.c.bf16 %v523_v27, %v523_v27 }
 0x176   : > { %1966 = vmatmul.mubr.msk.bf16.vlgmr.msra.gmra.mrb[0].mxu0 %vm499_vm1, %v524_v28 }
 0x177   : > { %1971 = vmatprep.mubr.msk.bf16.mxu0 %vm2267_vm2, %v2266_v10 }
 0x249   : > { %v2483_v30 = vpop.f32.mrb[0].mxu0 }
 0x24a   : > { %v598_v31 = vadd.f32 %v596_v29, %v2483_v30  ;;  %v1967_v32 = vpop.f32.mrb[1].mxu0  ;;  %v588_v38 = vadd.f32 %v587_v37, %v2483_v30 }
 0x24b   : > { %v581_v33 = vpop.f32.mrb[2].mxu0 }
 0x24c   : > { %v1968_v34 = vpop.f32.mrb[3].mxu0  ;;  %v747_v35 = vpack.c.bf16 %v598_v31, %v598_v31  ;;  %v589_v39 = vmul.f32 0.25, %v588_v38 }
 0x24e   : > { %751 = vrot.lane.b32.xlu0 %v747_v35, %s2269_s3  ;;  %749 = vrot.lane.b32.xlu1 %v747_v35, %s2270_s11  ;;  %v608_v42 = vpack.c.bf16 %v589_v39, %v589_v39 }
 0x250   : > { %v618_v54 = vrot.slane %v608_v42, %v2495_v49 }
 0x252   : > { %v619_v57 = vcombine.high %v618_v54, %v2274_v55  ;;  %v2505_v58 = vrot.slane %v618_v54, %v2499_v53 }
 0x254   : > { %v633_v61 = vrot.slane %v619_v57, %v2499_v53  ;;  %v634_v63 = vcombine.high %v2505_v58, %v2274_v55  ;;  %v665_v8 = vshrl.u32 %v2505_v58, 16 }
 0x256   : > { %v635_v7 = vcombine.high %v633_v61, %v2274_v55  ;;  %v673_v9 = vshrl.u32 %v634_v63, 16  ;;  %v681_v16 = vshrl.u32 %v633_v61, 16 }
 0x258   : > { %v689_v45 = vshrl.u32 %v635_v7, 16 }
 0x2c0   : > { %v750_v40 = vpop.permute.xlu1 %749  ;;  %v752_v51 = vpop.permute.xlu0 %751 }
 0x2c1   : > { %753 = vrot.lane.b32.xlu1 %v750_v40, %s2269_s3  ;;  %v762_v52 = vrot.slane %v752_v51, %v2495_v49 }
 0x2c3   : > { %v763_v56 = vcombine.high %v762_v52, %v2274_v55  ;;  %v770_v59 = vrot.slane %v762_v52, %v2499_v53 }
 0x2c5   : > { %610 = vrot.lane.b32.xlu1 %v608_v42, %s2270_s11  ;;  %v777_v60 = vrot.slane %v763_v56, %v2499_v53  ;;  %v778_v1 = vcombine.high %v770_v59, %v2274_v55  ;;  %v809_v17 = vshrl.u32 %v770_v59, 16 }
 0x2c7   : > { %v779_v3 = vcombine.high %v777_v60, %v2274_v55  ;;  %v817_v18 = vshrl.u32 %v778_v1, 16  ;;  %v825_v19 = vshrl.u32 %v777_v60, 16 }
 0x2c9   : > { %604 = vrot.lane.b32.xlu1 %v602_v43, %s2271_s22  ;;  %v833_v21 = vshrl.u32 %v779_v3, 16 }
 0x333   : > { %v754_v62 = vpop.permute.xlu1 %753 }
 0x334   : > { %v787_v0 = vrot.slane %v754_v62, %v2495_v49 }
 0x336   : > { %v788_v4 = vcombine.high %v787_v0, %v2274_v55  ;;  %v795_v5 = vrot.slane %v787_v0, %v2499_v53 }
 0x337   : > { %v611_v6 = vpop.permute.xlu1 %610 }
 0x338   : > { %v802_v11 = vrot.slane %v788_v4, %v2499_v53  ;;  %v803_v12 = vcombine.high %v795_v5, %v2274_v55  ;;  %v810_v14 = vshrl.u32 %v795_v5, 16  ;;  %v643_v20 = vrot.slane %v611_v6, %v2495_v49 }
 0x339   : > { %v807_v23 = vpack.i.b16 %v795_v5, %v770_v59 }
 0x33a   : > { %v804_v22 = vcombine.high %v802_v11, %v2274_v55  ;;  %v818_v24 = vshrl.u32 %v803_v12, 16  ;;  %v823_v25 = vpack.i.b16 %v802_v11, %v777_v60  ;;  %v826_v26 = vshrl.u32 %v802_v11, 16 }
 0x33b   : > { %v644_v27 = vcombine.high %v643_v20, %v2274_v55  ;;  %v651_v28 = vrot.slane %v643_v20, %v2499_v53  ;;  %v811_v29 = vpack.i.b16 %v810_v14, %v809_v17  ;;  %v815_v31 = vpack.i.b16 %v803_v12, %v778_v1 }
 0x33c   : > { %v831_v32 = vpack.i.b16 %v804_v22, %v779_v3  ;;  %v834_v33 = vshrl.u32 %v804_v22, 16  ;;  %v827_v34 = vpack.i.b16 %v826_v26, %v825_v19  ;;  %v837_v35 = vcombine.low %v807_v23, %v823_v25 }
 0x33d   : > { %v658_v36 = vrot.slane %v644_v27, %v2499_v53  ;;  %v659_v37 = vcombine.high %v651_v28, %v2274_v55  ;;  %v819_v38 = vpack.i.b16 %v818_v24, %v817_v18  ;;  %v666_v41 = vshrl.u32 %v651_v28, 16 }
 0x33e   : > { %v835_v39 = vpack.i.b16 %v834_v33, %v833_v21  ;;  %v845_v40 = vcombine.low %v815_v31, %v831_v32  ;;  %v861_v42 = vcombine.low %v811_v29, %v827_v34  ;;  %v663_v44 = vpack.i.b16 %v651_v28, %v2505_v58  ;;  %v1035_v31 = vld [vmem:[%s2727_s2] sm:$0xff] }
 0x33f   : > { %v660_v43 = vcombine.high %v658_v36, %v2274_v55  ;;  %v844_v46 = vrot.slane %v837_v35, %v2495_v49  ;;  %v671_v48 = vpack.i.b16 %v659_v37, %v634_v63  ;;  %v674_v50 = vshrl.u32 %v659_v37, 16 }
 0x340   : > { %v869_v47 = vcombine.low %v819_v38, %v835_v39  ;;  %v679_v51 = vpack.i.b16 %v658_v36, %v633_v61  ;;  %v682_v52 = vshrl.u32 %v658_v36, 16  ;;  %v667_v57 = vpack.i.b16 %v666_v41, %v665_v8 }
 0x341   : > { %v687_v54 = vpack.i.b16 %v660_v43, %v635_v7  ;;  %v690_v56 = vshrl.u32 %v660_v43, 16  ;;  %v675_v59 = vpack.i.b16 %v674_v50, %v673_v9  ;;  %v852_v60 = vrot.slane %v845_v40, %v2495_v49 }
 0x342   : > { %v868_v62 = vrot.slane %v861_v42, %v2495_v49  ;;  %v683_v0 = vpack.i.b16 %v682_v52, %v681_v16  ;;  %v876_v58 = vrot.slane %v869_v47, %v2495_v49  ;;  %v693_v5 = vcombine.low %v663_v44, %v679_v51  ;;  %v605_v44 = vpop.permute.xlu1 %604 }
 0x343   : > { %v691_v1 = vpack.i.b16 %v690_v56, %v689_v45  ;;  %v701_v3 = vcombine.low %v671_v48, %v687_v54  ;;  %v853_v4 = vcombine.low %v844_v46, %v852_v60  ;;  %v607_v45 = vadd.f32 %v605_v44, %v2483_v30 }
 0x344   : > { %v717_v6 = vcombine.low %v667_v57, %v683_v0  ;;  %v877_v11 = vcombine.low %v868_v62, %v876_v58  ;;  %v700_v14 = vrot.slane %v693_v5, %v2495_v49 }
 0x345   : > { %v725_v63 = vcombine.low %v675_v59, %v691_v1  ;;  %v708_v61 = vrot.slane %v701_v3, %v2495_v49  ;;  %v860_v9 = vrot.slane %v853_v4, %v2499_v53  ;;  %v891_v46 = vpack.c.bf16 %v607_v45, %v607_v45 }
 0x346   : > { %v724_v7 = vrot.slane %v717_v6, %v2495_v49  ;;  %v884_v12 = vrot.slane %v877_v11, %v2499_v53 }
 0x347   : > { %v732_v8 = vrot.slane %v725_v63, %v2495_v49  ;;  %v709_v18 = vcombine.low %v700_v14, %v708_v61  ;;  %v888_v22 = vshrl.u32 %v860_v9, 16 }
 0x348   : > { %v887_v17 = vpack.i.b16 %v884_v12, %v860_v9  ;;  %v889_v20 = vshrl.u32 %v884_v12, 16 }
 0x349   : > { %v733_v16 = vcombine.low %v724_v7, %v732_v8  ;;  %v716_v23 = vrot.slane %v709_v18, %v2499_v53 }
 0x34a   : > { %v1041_v19 = vsel %vm1036_vm3, %v887_v17, 0  ;;  %v890_v24 = vpack.i.b16 %v889_v20, %v888_v22 }
 0x34b   : > { %1970 = vmatpush3.bf16.xpose.msra.mxu0 %v1041_v19  ;;  %v740_v21 = vrot.slane %v733_v16, %v2499_v53  ;;  %v744_v28 = vshrl.u32 %v716_v23, 16 }
 0x34c   : > { %1975 = vmatprep.subr.bf16.mxu0 %v2266_v10  ;;  %v1087_v26 = vsel %vm1036_vm3, %v890_v24, 0 }
 0x34d   : > { %v743_v25 = vpack.i.b16 %v740_v21, %v716_v23  ;;  %v745_v27 = vshrl.u32 %v740_v21, 16 }
 0x34f   : > { %v746_v29 = vpack.i.b16 %v745_v27, %v744_v28 }
 0x352   : > { %1972 = vmatmul.mubr.msk.bf16.vlgmr.msra.gmra.mrb[4].mxu0 %vm1036_vm3, %v743_v25 }
 0x353   : > { %1976 = vmatpush3.bf16.xpose.msra.mxu0 %v1087_v26  ;;  %1977 = vmatprep.mubr.msk.bf16.mxu0 %vm2267_vm2, %v2266_v10 }
 0x354   : > { %1987 = vmatprep.subr.bf16.mxu0 %v2266_v10 }
 0x35a   : > { %1978 = vmatmul.mubr.msk.bf16.vlgmr.msra.gmra.mrb[8].mxu0 %vm1036_vm3, %v746_v29 }
 0x35b   : > { %1989 = vmatprep.mubr.msk.bf16.mxu0 %vm2267_vm2, %v2266_v10 }
 0x425   : > { %v1077_v32 = vpop.f32.mrb[4].mxu0 }
 0x426   : > { %v1078_v33 = vadd.f32 %v1077_v32, %v1035_v31  ;;  %v1973_v34 = vpop.f32.mrb[5].mxu0 }
 0x427   : > { %v1080_v35 = vpop.f32.mrb[6].mxu0 }
 0x428   : > { %v1974_v36 = vpop.f32.mrb[7].mxu0  ;;  %v1130_v37 = vsel %vm1129_vm4, %v1078_v33, -inf }
 0x429   : > { %1131 = vmax.xlane.f32.xlu1 %v1130_v37 }
 0x42d   : > { %v1123_v38 = vpop.f32.mrb[8].mxu0 }
 0x42e   : > { %v1124_v39 = vadd.f32 %v1123_v38, %v1035_v31  ;;  %v1979_v40 = vpop.f32.mrb[9].mxu0 }
 0x42f   : > { %v1126_v41 = vpop.f32.mrb[10].mxu0 }
 0x430   : > { %v1980_v42 = vpop.f32.mrb[11].mxu0  ;;  %v1133_v43 = vsel %vm1129_vm4, %v1124_v39, -inf }
 0x431   : > { %1134 = vmax.xlane.f32.xlu0 %v1133_v43 }
 0x43a   : > { %893 = vrot.lane.b32.xlu1 %v891_v46, %s2270_s11 }
 0x4b6   : > { %v1132_v47 = vpop.xlane.xlu1 %1131 }
 0x4b7   : > { %v1136_v48 = vsub.f32 %v1078_v33, %v1132_v47 }
 0x4b9   : > { %v1138_v50 = vmul.f32 1.442695, %v1136_v48 }
 0x4ba   : > { %v894_v51 = vpop.permute.xlu1 %893 }
 0x4bb   : > { %2137 = vpow2.f32 %v1138_v50  ;;  %897 = vrot.lane.b32.xlu1 %v894_v51, %s2271_s22 }
 0x4be   : > { %v1135_v52 = vpop.xlane.xlu0 %1134 }
 0x4bf   : > { %v1137_v54 = vsub.f32 %v1124_v39, %v1135_v52 }
 0x4c1   : > { %v1140_v56 = vmul.f32 1.442695, %v1137_v54 }
 0x4c3   : > { %2139 = vpow2.f32 %v1140_v56 }
 0x4c5   : > { %v2138_v57 = vpop.eup %2137 }
 0x4c6   : > { %v1142_v59 = vsel %vm1129_vm4, %v2138_v57, 0.0 }
 0x4c7   : > { %1143 = vadd.xlane.f32.xlu0 %v1142_v59 }
 0x4cd   : > { %v2140_v60 = vpop.eup %2139 }
 0x4ce   : > { %v1145_v30 = vsel %vm1129_vm4, %v2140_v60, 0.0 }
 0x4cf   : > { %1146 = vadd.xlane.f32.xlu0 %v1145_v30 }
 0x4e5   : > { %895 = vrot.lane.b32.xlu0 %v891_v46, %s2271_s22 }
 0x52d   : > { %v898_v62 = vpop.permute.xlu1 %897 }
 0x52e   : > { %v931_v1 = vrot.slane %v898_v62, %v2495_v49 }
 0x530   : > { %v932_v58 = vcombine.high %v931_v1, %v2274_v55  ;;  %v939_v4 = vrot.slane %v931_v1, %v2499_v53 }
 0x532   : > { %v946_v6 = vrot.slane %v932_v58, %v2499_v53  ;;  %v947_v11 = vcombine.high %v939_v4, %v2274_v55  ;;  %v954_v14 = vshrl.u32 %v939_v4, 16 }
 0x534   : > { %v948_v8 = vcombine.high %v946_v6, %v2274_v55  ;;  %v962_v17 = vshrl.u32 %v947_v11, 16  ;;  %v970_v18 = vshrl.u32 %v946_v6, 16 }
 0x536   : > { %v978_v24 = vshrl.u32 %v948_v8, 16 }
 0x554   : > { %v1144_v0 = vpop.xlane.xlu0 %1143 }
 0x555   : > { %2141 = vrcp.f32 %v1144_v0 }
 0x55c   : > { %v1147_v3 = vpop.xlane.xlu0 %1146 }
 0x55d   : > { %2143 = vrcp.f32 %v1147_v3 }
 0x55f   : > { %v2142_v43 = vpop.eup %2141 }
 0x560   : > { %v896_v5 = vpop.permute.xlu0 %895  ;;  %v1150_v50 = vmul.f32 %v2142_v43, %v2138_v57  ;;  %v2123_v57 = vld [vmem:[%s2433_s28] sm:$0xff]  }
 0x561   : > { %v906_v63 = vrot.slane %v896_v5, %v2495_v49 }
 0x562   : > { %v1152_v59 = vpack.c.bf16 %v1150_v50, %v1150_v50 }
 0x563   : > { %v907_v61 = vcombine.high %v906_v63, %v2274_v55  ;;  %v914_v7 = vrot.slane %v906_v63, %v2499_v53 }
 0x565   : > { %v921_v9 = vrot.slane %v907_v61, %v2499_v53  ;;  %v922_v12 = vcombine.high %v914_v7, %v2274_v55  ;;  %v953_v16 = vshrl.u32 %v914_v7, 16  ;;  %v951_v21 = vpack.i.b16 %v939_v4, %v914_v7 }
 0x567   : > { %v923_v19 = vcombine.high %v921_v9, %v2274_v55  ;;  %v961_v20 = vshrl.u32 %v922_v12, 16  ;;  %v967_v22 = vpack.i.b16 %v946_v6, %v921_v9  ;;  %v969_v23 = vshrl.u32 %v921_v9, 16  ;;  %v2144_v45 = vpop.eup %2143 }
 0x568   : > { %v959_v25 = vpack.i.b16 %v947_v11, %v922_v12  ;;  %v955_v28 = vpack.i.b16 %v954_v14, %v953_v16  ;;  %v1151_v51 = vmul.f32 %v2144_v45, %v2140_v60 }
 0x569   : > { %v975_v26 = vpack.i.b16 %v948_v8, %v923_v19  ;;  %v977_v27 = vshrl.u32 %v923_v19, 16  ;;  %v971_v29 = vpack.i.b16 %v970_v18, %v969_v23  ;;  %v981_v31 = vcombine.low %v951_v21, %v967_v22  ;;  %v2124_v19 = vld [vmem:[%s2433_s28 + $0x8] sm:$0xff]   ;;  %s2275_s28 = smov 16  }
 0x56a   : > { %v963_v32 = vpack.i.b16 %v962_v17, %v961_v20  ;;  %v1153_v30 = vpack.c.bf16 %v1151_v51, %v1151_v51 }
 0x56b   : > { %v979_v33 = vpack.i.b16 %v978_v24, %v977_v27  ;;  %v989_v34 = vcombine.low %v959_v25, %v975_v26  ;;  %v1005_v35 = vcombine.low %v955_v28, %v971_v29  ;;  %v988_v36 = vrot.slane %v981_v31, %v2495_v49 }
 0x56d   : > { %v996_v55 = vrot.slane %v989_v34, %v2495_v49  ;;  %v1013_v37 = vcombine.low %v963_v32, %v979_v33  ;;  %v1012_v39 = vrot.slane %v1005_v35, %v2495_v49 }
 0x56f   : > { %v997_v38 = vcombine.low %v988_v36, %v996_v55  ;;  %v1020_v40 = vrot.slane %v1013_v37, %v2495_v49 }
 0x571   : > { %v1004_v41 = vrot.slane %v997_v38, %v2499_v53  ;;  %v1021_v42 = vcombine.low %v1012_v39, %v1020_v40 }
 0x573   : > { %v1028_v44 = vrot.slane %v1021_v42, %v2499_v53  ;;  %v1032_v47 = vshrl.u32 %v1004_v41, 16 }
 0x575   : > { %v1031_v46 = vpack.i.b16 %v1028_v44, %v1004_v41  ;;  %v1033_v48 = vshrl.u32 %v1028_v44, 16 }
 0x577   : > { %v1034_v52 = vpack.i.b16 %v1033_v48, %v1032_v47  ;;  %v1159_v54 = vsel %vm1157_vm5, %v1031_v46, 0 }
 0x578   : > { %1982 = vmatpush3.bf16.msra.mxu1 %v1159_v54  ;;  %v2126_v54 = vld [vmem:[%s2438_s30 + $0x8] sm:$0xff]  }
 0x579   : > { %v1205_v56 = vsel %vm1157_vm5, %v1034_v52, 0  ;;  %1993 = vmatprep.subr.bf16.mxu1 %v2266_v10  ;;  %v2125_v52 = vld [vmem:[%s2438_s30] sm:$0xff]  }
 0x57a   : > { %1988 = vmatpush3.bf16.msra.mxu0 %v1205_v56 }
 0x57b   : > { %1984 = vmatmul.mubr.msk.bf16.vlgmr.msra.gmra.mrb[0].mxu1 %vm1129_vm4, %v1152_v59  ;;  %2001 = vmatprep.subr.bf16.mxu0 %v2266_v10 }
 0x57c   : > { %1997 = vmatprep.mubr.msk.bf16.mxu1 %vm2267_vm2, %v2266_v10  ;;  %1994 = vmatpush3.bf16.msra.mxu1 %v2123_v57  ;;  %v1453_v57 = vsub.s32 7, %v2469_v13 }
 0x57d   : > { %1990 = vmatmul.mubr.msk.bf16.vlgmr.msra.gmra.mrb[12].mxu0 %vm1129_vm4, %v1153_v30  ;;  %1995 = vmatprep.subr.bf16.mxu1 %v2266_v10  ;;  %v1448_v30 = vsub.s32 6, %v2469_v13 }
 0x57e   : > { %2005 = vmatprep.mubr.msk.bf16.mxu0 %vm2267_vm2, %v2266_v10  ;;  %2002 = vmatpush3.bf16.msra.mxu0 %v2125_v52 }
 0x57f   : > { %2003 = vmatprep.subr.bf16.mxu0 %v2266_v10 }
 0x580   : > { %1996 = vmatpush3.bf16.msra.mxu1 %v2124_v19 }
 0x581   : > { %2009 = vmatprep.subr.bf16.mxu1 %v2266_v10 }
 0x582   : > { %2004 = vmatpush3.bf16.msra.mxu0 %v2126_v54 }
 0x64e   : > { %v1195_v60 = vpop.f32.mrb[0].mxu1 }
 0x64f   : > { %v1247_v62 = vcombine.high %v1195_v60, %v2266_v10  ;;  %v1985_v0 = vpop.f32.mrb[1].mxu1  ;;  %v1254_v58 = vrot.slane %v1195_v60, %v2495_v49  ;;  %v1449_v60 = vrot.slane %v2473_v15, %v1448_v30 }
 0x650   : > { %v1198_v1 = vpop.f32.mrb[2].mxu1  ;;  %v1241_v3 = vpop.f32.mrb[12].mxu0 }
 0x651   : > { %v1262_v4 = vcombine.high %v1241_v3, %v2266_v10  ;;  %v1269_v5 = vrot.slane %v1241_v3, %v2495_v49  ;;  %v1986_v6 = vpop.f32.mrb[3].mxu1  ;;  %v1991_v63 = vpop.f32.mrb[13].mxu0  ;;  %v1261_v61 = vrot.slane %v1247_v62, %v2495_v49  ;;  %v1454_v1 = vrot.slane %v2473_v15, %v1453_v57 }
 0x652   : > { %v1244_v11 = vpop.f32.mrb[14].mxu0  ;;  %v2129_v6 = vld [vmem:[%s2448_s18 + $0x10] sm:$0xff]   ;;  %v2131_v63 = vld [vmem:[%s2448_s18 + $0x20] sm:$0xff]  }
 0x653   : > { %v1276_v7 = vrot.slane %v1262_v4, %v2495_v49  ;;  %v1277_v8 = vcombine.low %v1254_v58, %v1269_v5  ;;  %v1278_v9 = vcombine.high %v1254_v58, %v1269_v5  ;;  %v1992_v12 = vpop.f32.mrb[15].mxu0  ;;  %v2127_v5 = vld [vmem:[%s2448_s18] sm:$0xff]   ;;  %v2132_v11 = vld [vmem:[%s2448_s18 + $0x28] sm:$0xff]  }
 0x655   : > { %v1285_v14 = vrot.slane %v1277_v8, %v2499_v53  ;;  %v1292_v16 = vrot.slane %v1278_v9, %v2499_v53  ;;  %v1293_v17 = vcombine.low %v1261_v61, %v1276_v7  ;;  %v1294_v18 = vcombine.high %v1261_v61, %v1276_v7  ;;  %v2133_v61 = vld [vmem:[%s2448_s18 + $0x30] sm:$0xff]   ;;  %v2134_v7 = vld [vmem:[%s2448_s18 + $0x38] sm:$0xff]   ;;  %v1906_v8 = vld [vmem:[%s481_s27] ss:$0 sm:$0xff] }
 0x657   : > { %v1301_v20 = vrot.slane %v1293_v17, %v2499_v53  ;;  %v1308_v21 = vrot.slane %v1294_v18, %v2499_v53  ;;  %v1313_v22 = vcombine.low %v1285_v14, %v1292_v16  ;;  %v1901_v23 = vcombine.high %v1285_v14, %v1292_v16 }
 0x659   : > { %v1320_v24 = vrot.slane %v1313_v22, %v2495_v49  ;;  %v1328_v25 = vrot.slane %v1901_v23, %v2495_v49  ;;  %v1329_v26 = vcombine.low %v1301_v20, %v1308_v21  ;;  %v1902_v27 = vcombine.high %v1301_v20, %v1308_v21 }
 0x65b   : > { %v1336_v28 = vrot.slane %v1329_v26, %v2495_v49  ;;  %v1344_v29 = vrot.slane %v1902_v27, %v2495_v49  ;;  %v1345_v31 = vcombine.low %v1320_v24, %v1328_v25  ;;  %v1375_v49 = vsub.s32 5, %v2469_v13  ;;  %v2128_v13 = vld [vmem:[%s2448_s18 + $0x8] sm:$0xff]  }
 0x65c   : > { %v1911_v24 = vld [vmem:[%s2425_s26 + $0x8] ss:$0 sm:$0xff] }
 0x65d   : > { %v1353_v32 = vcombine.low %v1336_v28, %v1344_v29  ;;  %v1352_v33 = vrot.slane %v1345_v31, %v2499_v53  ;;  %v1376_v39 = vrot.slane %v2473_v15, %v1375_v49  ;;  %v2130_v15 = vld [vmem:[%s2448_s18 + $0x18] sm:$0xff]   ;;  %v2276_v49 = vmov (!%p1920_p6), 0.0  }
 0x65e   : > { %2029 = vmatprep.subr.bf16.mxu0 (!%p1920_p6), %v2276_v49 }
 0x65f   : > { %v1360_v34 = vrot.slane %v1353_v32, %v2499_v53 }
 0x661   : > { %v1362_v35 = vcombine.high %v1352_v33, %v1360_v34  ;;  %v1361_v36 = vcombine.low %v1352_v33, %v1360_v34 }
 0x663   : > { %1364 = vrot.lane.b32.xlu1 %v1362_v35, %s2275_s28 }
 0x6d5   : > { %v1365_v55 = vpop.permute.xlu1 %1364 }
 0x6d6   : > { %v1367_v37 = vsel %vm1036_vm3, %v1361_v36, %v1365_v55 }
 0x6d7   : > { %v1368_v38 = vpack.c.bf16 %v1367_v37, %v1367_v37 }
 0x6d9   : > { %1998 = vmatmul.mubr.msk.bf16.vlgmr.msra.gmra.mrb[4].mxu1 %vm499_vm1, %v1368_v38  ;;  %v2151_v38 = vld [vmem:[%s2735_s10] sm:$0xff] (!%p1920_p6)  }
 0x6da   : > { %2025 = vmatprep.mubr.msk.bf16.mxu1 %vm2267_vm2, %v2266_v10  ;;  %2010 = vmatpush3.bf16.msra.mxu1 %v2127_v5 }
 0x6db   : > { %2011 = vmatprep.subr.bf16.mxu1 %v2266_v10 }
 0x6de   : > { %2012 = vmatpush3.bf16.msra.mxu1 %v2128_v13 }
 0x6df   : > { %2013 = vmatprep.subr.bf16.mxu1 %v2266_v10 }
 0x6e2   : > { %2014 = vmatpush3.bf16.msra.mxu1 %v2129_v6 }
 0x6e3   : > { %2015 = vmatprep.subr.bf16.mxu1 %v2266_v10 }
 0x6e6   : > { %2016 = vmatpush3.bf16.msra.mxu1 %v2130_v15 }
 0x6e7   : > { %2017 = vmatprep.subr.bf16.mxu1 %v2266_v10 }
 0x6ea   : > { %2018 = vmatpush3.bf16.msra.mxu1 %v2131_v63 }
 0x6eb   : > { %2019 = vmatprep.subr.bf16.mxu1 %v2266_v10 }
 0x6ee   : > { %2020 = vmatpush3.bf16.msra.mxu1 %v2132_v11 }
 0x6ef   : > { %2021 = vmatprep.subr.bf16.mxu1 %v2266_v10 }
 0x6f2   : > { %2022 = vmatpush3.bf16.msra.mxu1 %v2133_v61 }
 0x6f3   : > { %2023 = vmatprep.subr.bf16.mxu1 %v2266_v10 }
 0x6f6   : > { %2024 = vmatpush3.bf16.msra.mxu1 %v2134_v7 }
 0x7ac   : > { %v1426_v40 = vpop.f32.mrb[4].mxu1 }
 0x7ad   : > { %v1427_v53 = vadd.f32 %v1426_v40, %v1376_v39  ;;  %v1999_v41 = vpop.f32.mrb[5].mxu1  ;;  %v2152_v39 = vld [vmem:[%s2735_s10 + $0x8] sm:$0xff] (!%p1920_p6)  }
 0x7ae   : > { %v1429_v42 = vpop.f32.mrb[6].mxu1 }
 0x7af   : > { %v2615_v43 = vadd.f32 %v1427_v53, %v2455_v2  ;;  %v2000_v44 = vpop.f32.mrb[7].mxu1 }
 0x7b1   : > { %v1433_v45 = vsel %vm499_vm1, %v2615_v43, 0.0 }
 0x7b2   : > { %1434 = vadd.xlane.f32.xlu1 %v1433_v45  ;;  %v1650_v45 = vld [vmem:[%s2734_s9 + $0x1] sm:$0x1] (!%p1920_p6) }
 0x83f   : > { %v1435_v46 = vpop.xlane.xlu1 %1434 }
 0x840   : > { %v1436_v47 = vmul.f32 0.03125, %v1435_v46 }
 0x842   : > { %v1437_v48 = vsub.f32 %v2615_v43, %v1436_v47 }
 0x844   : > { %v1438_v50 = vmul.f32 %v1437_v48, %v1437_v48 }
 0x846   : > { %v1439_v51 = vsel %vm499_vm1, %v1438_v50, 0.0 }
 0x847   : > { %1440 = vadd.xlane.f32.xlu0 %v1439_v51 }
 0x8d4   : > { %v1441_v2 = vpop.xlane.xlu0 %1440 }
 0x8d5   : > { %v1442_v56 = vmul.f32 0.03125, %v1441_v2 }
 0x8d7   : > { %v1443_v59 = vadd.f32 1e-05, %v1442_v56 }
 0x8d9   : > { %2145 = vrsqrt.f32 %v1443_v59 }
 0x8e3   : > { %v2146_v62 = vpop.eup %2145 }
 0x8e4   : > { %v1445_v0 = vmul.f32 %v2146_v62, %v1437_v48 }
 0x8e6   : > { %v1450_v3 = vmul.f32 %v1449_v60, %v1445_v0 }
 0x8e8   : > { %v1455_v58 = vadd.f32 %v1454_v1, %v1450_v3 }
 0x8ea   : > { %v1456_v4 = vpack.c.bf16 %v1455_v58, %v1455_v58 }
 0x8ec   : > { %2006 = vmatmul.mubr.msk.bf16.vlgmr.msra.gmra.mrb[16].mxu0 %vm499_vm1, %v1456_v4 }
 0x8ed   : > { %2033 = vmatprep.mubr.msk.bf16.mxu0 (!%p1920_p6), %vm2277_vm7, %v2276_v49  ;;  %2030 = vmatpush3.bf16.msra.mxu0 (!%p1920_p6), %v2151_v38 }
 0x8ee   : > { %2031 = vmatprep.subr.bf16.mxu0 (!%p1920_p6), %v2276_v49 }
 0x8f1   : > { %2032 = vmatpush3.bf16.msra.mxu0 (!%p1920_p6), %v2152_v39 }
 0x9bf   : > { %v1517_v9 = vpop.f32.mrb[16].mxu0 }
 0x9c0   : > { %v1518_v12 = vadd.f32 %v1906_v8, %v1517_v9  ;;  %v2007_v14 = vpop.f32.mrb[17].mxu0 }
 0x9c1   : > { %v1520_v16 = vpop.f32.mrb[18].mxu0 }
 0x9c2   : > { %v1910_v17 = vmul.f32 -1.702, %v1518_v12  ;;  %v2008_v18 = vpop.f32.mrb[19].mxu0 }
 0x9c4   : > { %v1525_v19 = vmul.f32 1.442695, %v1910_v17 }
 0x9c6   : > { %2147 = vpow2.f32 %v1525_v19 }
 0x9d0   : > { %v2148_v20 = vpop.eup %2147 }
 0x9d1   : > { %v1527_v21 = vadd.f32 1.0, %v2148_v20 }
 0x9d3   : > { %2149 = vrcp.f32 %v1527_v21 }
 0x9dd   : > { %v2150_v10 = vpop.eup %2149 }
 0x9de   : > { %v1530_v22 = vmul.f32 %v2150_v10, %v1518_v12 }
 0x9e0   : > { %v1531_v23 = vpack.c.bf16 %v1530_v22, %v1530_v22 }
 0x9e2   : > { %2026 = vmatmul.mubr.bf16.vlgmr.msra.gmra.mrb[8].mxu1 %v1531_v23 }
 0xab4   : > { %1645 = sbr.rel (%p1920_p6) target bundleno = 3284 (0xcd4), region = 68 }
 0xab5   : > { %v1634_v25 = vpop.f32.mrb[8].mxu1 }
 0xab6   : > { %v1635_v26 = vadd.f32 %v1911_v24, %v1634_v25  ;;  %v2027_v27 = vpop.f32.mrb[9].mxu1 }
 0xab7   : > { %v1637_v28 = vpop.f32.mrb[10].mxu1 }
 0xab8   : > { %v1640_v29 = vadd.f32 %v1635_v26, %v2615_v43  ;;  %v2028_v31 = vpop.f32.mrb[11].mxu1  ;;  %v1649_v43 = vld [vmem:[%s2734_s9] sm:$0x1] (!%p1920_p6) }
 0xaba   : > { %1641 = vst.msk [vmem:[#allocation2] sm:$0xff] %vm499_vm1, %v1640_v29 }
 0xac1   : > { %v1648_v32 = vld [vmem:[%s1647_s20] sm:$0x1] }
 0xac2   : > { %v1652_v33 = vsel %vm1651_vm6, %v1648_v32, 0.0 }
 0xac3   : > { %1653 = vadd.xlane.f32.xlu0 %v1652_v33 }
 0xb50   : > { %v1654_v34 = vpop.xlane.xlu0 %1653 }
 0xb51   : > { %v1655_v35 = vmul.f32 0.03125, %v1654_v34 }
 0xb53   : > { %v1656_v36 = vsub.f32 %v1648_v32, %v1655_v35 }
 0xb55   : > { %v1657_v55 = vmul.f32 %v1656_v36, %v1656_v36 }
 0xb57   : > { %v1658_v37 = vsel %vm1651_vm6, %v1657_v55, 0.0 }
 0xb58   : > { %1659 = vadd.xlane.f32.xlu0 %v1658_v37 }
 0xbe5   : > { %v1660_v40 = vpop.xlane.xlu0 %1659 }
 0xbe6   : > { %v1661_v53 = vmul.f32 0.03125, %v1660_v40 }
 0xbe8   : > { %v1662_v41 = vadd.f32 1e-05, %v1661_v53 }
 0xbea   : > { %2153 = vrsqrt.f32 %v1662_v41 }
 0xbf4   : > { %v2154_v42 = vpop.eup %2153 }
 0xbf5   : > { %v1664_v44 = vmul.f32 %v2154_v42, %v1656_v36 }
 0xbf7   : > { %v1665_v46 = vmul.f32 %v1664_v44, %v1649_v43 }
 0xbf9   : > { %v1666_v47 = vadd.f32 %v1665_v46, %v1650_v45 }
 0xbfb   : > { %v1667_v48 = vpack.c.bf16 %v1666_v47, %v1666_v47 }
 0xbfd   : > { %2034 = vmatmul.mubr.msk.bf16.vlgmr.msra.gmra.mrb[0].mxu0 %vm499_vm1, %v1667_v48 }
 0xcd0   : > { %v1721_v50 = vpop.f32.mrb[0].mxu0 }
 0xcd1   : > { %1727 = vst.msk [vmem:[%s2452_s4] sm:$0x1] %vm1651_vm6, %v1721_v50  ;;  %v2035_v51 = vpop.f32.mrb[1].mxu0 }
 0xcd2   : > { %v1724_v52 = vpop.f32.mrb[2].mxu0 }
 0xcd3   : > { %v2036_v54 = vpop.f32.mrb[3].mxu0 }
 0xcd4 PF: > { %s1924_s19 = sshll.u32 %s2251_s25, 4  ;;  %s2765_s11 = sld [smem:[#allocation21_spill]] }
 0xcd5   : > { %s1741_s0 = sshll.u32 %s2452_s4, 4  ;;  %s2766_s13 = sand.u32 1, %s2239_s23   ;;  %s1742_s0 = int_to_ptr.vmem [resolvable:$true] %s1741_s0 }
 0xcd6   : > { %s1729_s28 = scalar_lea.sflag [#allocation6], %s2766_s13  ;;  %s2167_s15 = scalar_lea.vmem %s1742_s0, 16 }
 0xcd7   : > { %p2168_p7 = scmp.ne.s32.totalorder %s1742_s0, %s2167_s15  ;;  %s2278_s17 = smov [#allocation5]  }
 0xcd8   : > { %s2171_s21 = sshll.u32 %s2278_s17, 4  ;;  %s2172_s21 = int_to_ptr.vmem [resolvable:$false] %s2171_s21 }
 0xcd9   : > { %p2169_p9 = pnand %p2168_p7, %p2391_p8  ;;  %s2173_s20 = scalar_lea.vmem %s2172_s21, 32 }
 0xcda   : > { %s2675_s22 = scalar_lea.hbm %s2765_s11, %s1924_s19  ;;  %p2174_p11 = scmp.lt.s32.totalorder %s1742_s0, %s2172_s21 }
 0xcdb   : > { %p2170_p10 = pneg %p2169_p9  ;;  %p2175_p12 = scmp.lt.s32.totalorder %s2173_s20, %s2167_s15 }
 0xcdd   : > { %p2176_p13 = por %p2175_p12, %p2174_p11 }
 0xcdf   : > { %p2177_p1 = pnand %p2176_p13, %p2170_p10 }
 0xce1   : > { %2180 = shalt.err (!%p2177_p1)
}
 0xce2   : > { %s2181_s4 = scalar_lea.hbm %s2675_s22, 16  ;;  %s2185_s30 = scalar_lea.hbm %s2765_s11, 32 }
 0xce3   : > { %p2182_p2 = scmp.ne.s32.totalorder %s2675_s22, %s2181_s4  ;;  %p2186_p5 = scmp.lt.u32.totalorder %s2675_s22, %s2765_s11 }
 0xce4   : > { %p2187_p6 = scmp.lt.u32.totalorder %s2185_s30, %s2181_s4  ;;  %p2189_p9 = scmp.lt.u32.totalorder %s2181_s4, %s2675_s22 }
 0xce5   : > { %p2183_p3 = pnand %p2182_p2, %p2391_p8 }
 0xce6   : > { %p2188_p7 = por %p2187_p6, %p2186_p5 }
 0xce7   : > { %p2184_p4 = pneg %p2183_p3 }
 0xce8   : > { %p2190_p10 = por %p2189_p9, %p2188_p7 }
 0xcea   : > { %p2191_p11 = pnand %p2190_p10, %p2184_p4 }
 0xcec   : > { %2194 = shalt.err (!%p2191_p11)
}
 0xced   : > { %2037 = dma.vmem_to_hbm [thread:$0]  (%p2391_p8), %s1742_s0, 16, %s2675_s22, %s1729_s28  }
 0xcee PF: > { %s2767_s16 = sld [smem:[#allocation13_spill]]  ;;  %s2768_s27 = sld [smem:[#allocation9_spill]] }
 0xcf4   : > { %p2043_p12 = scmp.ge.s32.totalorder %s2767_s16, 2  ;;  %s1753_s18 = sand.u32 1, %s2768_s27  }
 0xcf5   : > { %s1754_s19 = scalar_lea.sflag [#allocation6], %s1753_s18 }
 0xcf6   : > { %p2040_p13 = pnand %p2043_p12, %p2401_p0 }
 0xcf8   : > { %2230 = dma.done.wait (!%p2040_p13), %s1754_s19, 16  }
 0xcf9   : > { %2232 = vsyncadd (!%p2040_p13), %s1754_s19, 4294967280  ;;  %s30_s28 = sadd.s32 1, %s2767_s16   ;;  %s2770_s1 = sld [smem:[#allocation10_spill]] }
 0xcfa   : > { %p27_p1 = scmp.ge.s32.totalorder %s30_s28, 6   ;;  %s2771_s0 = sld [smem:[#allocation17_spill]] }
 0xcfb   : > { %s2772_s24 = sld [smem:[#allocation11_spill]]  ;;  %s2773_s25 = sld [smem:[#allocation12_spill]] }
 0xcfc   : > { %s2774_s26 = sld [smem:[#allocation14_spill]]  ;;  %s2775_s27 = sld [smem:[#allocation15_spill]] }
 0xcfd   : > { %s2776_s22 = smov %s2239_s23  ;;  %29 = sbr.rel (!%p27_p1) target bundleno = 22 (0x16), region = 122 }
 0xcff   : > { %s2777_s23 = smov %s2770_s1 }
 0xd04   :  { %1758 = vsyncpa [#allocation6], 1 }
 0xd05   :  { %1760 = vsyncpa [#allocation6 + $0x1], 1 }

</bundles_post_ra>
